<compile_context>
chip_gen: v7x
topology: tpu7x:2x2x1
jax: 0.10.0
libtpu: 0.0.40
codegen_flags: <defaults>
</compile_context>

<pallas_src>
import functools

import jax
import jax.numpy as jnp
from jax.experimental import pallas as pl
from jax.experimental.pallas import tpu as pltpu


def _round_up(x, m):
    return (x + m - 1) // m * m


def _mlp_kernel(num_layers, *refs):
    """Fused MLP forward over one batch tile.

    refs = (x_ref, w0_ref, b0_ref, w1_ref, b1_ref, ..., out_ref)
    Hidden layers get ReLU; the final layer does not (matches QNetwork.forward).
    Matmuls accumulate in f32 on the MXU; bias add / ReLU are done in f32.
    """
    x_ref = refs[0]
    out_ref = refs[-1]
    param_refs = refs[1:-1]

    h = x_ref[...]
    for layer in range(num_layers):
        w_ref = param_refs[2 * layer]
        b_ref = param_refs[2 * layer + 1]
        h = jnp.dot(h, w_ref[...], preferred_element_type=jnp.float32)
        h = h + b_ref[...]
        if layer < num_layers - 1:  # ReLU on hidden layers only
            h = jnp.maximum(h, 0.0)
    out_ref[...] = h.astype(out_ref.dtype)


def qnetwork_forward(state, params, *, block_batch=4096):
    """Run the fused QNetwork forward pass as one batch-tiled pallas_call.

    state:  (batch, state_size) f32
    params: list of (W, b) with W: (in, out) f32, b: (1, out) f32
    block_batch: target rows per batch tile (multiple of 8 sublanes; sweep
                 2048-8192 for large RL batches).
    returns (batch, action_size) f32
    """
    num_layers = len(params)
    batch, state_size = state.shape
    action_size = params[-1][0].shape[1]

    # --- Batch tiling ---------------------------------------------------------
    # Tile rows in multiples of 8 sublanes. Cap the tile so that large batches
    # still produce >= ~8 grid iterations (keeps both v7x TensorCores busy via
    # the "parallel" grid axis). No jnp.pad: the last tile may be partial and
    # Pallas masks its out-of-bounds output rows.
    tb_req = max(8, _round_up(block_batch, 8))
    tb_cap = max(8, _round_up(pl.cdiv(batch, 8), 8))
    tb = min(tb_req, tb_cap)
    grid = (pl.cdiv(batch, tb),)

    flat_params = []
    for w, b in params:
        flat_params.append(w)
        flat_params.append(b)

    # Weights / biases: full-array blocks with a constant index_map, so they are
    # DMA'd once and stay resident in VMEM across all batch tiles.
    param_specs = [pl.BlockSpec(p.shape, lambda i: (0, 0)) for p in flat_params]

    in_specs = [pl.BlockSpec((tb, state_size), lambda i: (i, 0))] + param_specs
    out_specs = pl.BlockSpec((tb, action_size), lambda i: (i, 0))

    # --- VMEM budget (fits v7x's 64 MiB VMEM with headroom) -------------------
    widths = [state_size] + [w.shape[1] for w, _ in params]
    max_width = max(widths)
    param_bytes = sum(int(p.size) * p.dtype.itemsize for p in flat_params)
    tile_bytes = (
        2 * tb * state_size * 4        # double-buffered input tile
        + 2 * tb * action_size * 4     # double-buffered output tile
        + 4 * tb * max_width * 4       # activation temporaries
        + 2 * param_bytes              # resident weights/biases (+ margin)
    )
    vmem_limit = int(min(48 * 1024 * 1024, max(16 * 1024 * 1024, 2 * tile_bytes)))

    # --- Advisory cost estimate (unpadded shapes) ------------------------------
    layer_dims = []
    in_f = state_size
    for w, _ in params:
        layer_dims.append((in_f, w.shape[1]))
        in_f = w.shape[1]
    flops = 2 * batch * sum(i * o for i, o in layer_dims)
    bytes_accessed = 4 * batch * (state_size + action_size) + param_bytes
    cost = pl.CostEstimate(flops=flops, transcendentals=0,
                           bytes_accessed=bytes_accessed)

    kernel = functools.partial(_mlp_kernel, num_layers)

    out = pl.pallas_call(
        kernel,
        out_shape=jax.ShapeDtypeStruct((batch, action_size), jnp.float32),
        grid=grid,
        in_specs=in_specs,
        out_specs=out_specs,
        compiler_params=pltpu.CompilerParams(
            # Batch tiles are independent: lets v7x shard the grid across its
            # 2 TensorCores; harmless no-op on v5e/v6e.
            dimension_semantics=("parallel",),
            vmem_limit_bytes=vmem_limit,
        ),
        cost_estimate=cost,
    )(state, *flat_params)

    return out


def init_qnetwork_params(key, state_size, action_size, hidden_units):
    """Deterministic synthetic init mirroring the PyTorch module's shapes.

    Hidden-layer weights: uniform(-1/sqrt(in), 1/sqrt(in)) (as in __init__).
    Biases / final layer: same uniform bound (PyTorch nn.Linear default bound).
    Weights are stored as (in, out) = PyTorch weight transposed.
    """
    params = []
    in_size = state_size
    sizes = list(hidden_units) + [action_size]
    for out_size in sizes:
        key, kw, kb = jax.random.split(key, 3)
        bound = 1.0 / jnp.sqrt(jnp.float32(in_size))
        w = jax.random.uniform(kw, (in_size, out_size), jnp.float32, -bound, bound)
        b = jax.random.uniform(kb, (1, out_size), jnp.float32, -bound, bound)
        params.append((w, b))
        in_size = out_size
    return params


def qnetwork_reference(state, params):
    """Pure-JAX reference for correctness checking."""
    h = state
    for i, (w, b) in enumerate(params):
        h = h @ w + b
        if i < len(params) - 1:
            h = jnp.maximum(h, 0.0)
    return h


if __name__ == "__main__":
    # Small shapes consistent with the module: Leduc-poker-ish state/action dims.
    batch = 2
    state_size = 16
    action_size = 4
    hidden_units = [32, 32]

    key = jax.random.PRNGKey(0)
    key, kx = jax.random.split(key)
    state = jax.random.normal(kx, (batch, state_size), dtype=jnp.float32)

    params = init_qnetwork_params(key, state_size, action_size, hidden_units)

    out = qnetwork_forward(state, params, block_batch=4096)
    out = jax.block_until_ready(out)

    ref = qnetwork_reference(state, params)
    assert out.shape == (batch, action_size)
    assert jnp.allclose(out, ref, atol=1e-5, rtol=1e-5), "Pallas output mismatch vs reference"

    print("KERNEL_OK")
</pallas_src>

<mosaic_0001>
module attributes {stable_mosaic.version = 11 : i64} {
  func.func @_mlp_kernel(%arg0: i32, %arg1: memref<8x16xf32, #tpu.memory_space<vmem>>, %arg2: memref<16x32xf32, #tpu.memory_space<vmem>>, %arg3: memref<1x32xf32, #tpu.memory_space<vmem>>, %arg4: memref<32x32xf32, #tpu.memory_space<vmem>>, %arg5: memref<1x32xf32, #tpu.memory_space<vmem>>, %arg6: memref<32x4xf32, #tpu.memory_space<vmem>>, %arg7: memref<1x4xf32, #tpu.memory_space<vmem>>, %arg8: memref<8x4xf32, #tpu.memory_space<vmem>>) attributes {dimension_semantics = [#tpu.dimension_semantics<parallel>], iteration_bounds = array<i64: 1>, scalar_prefetch = 0 : i64, scratch_operands = 0 : i64, tpu.core_type = #tpu.core_type<tc>, window_params = [{transform_indices = @transform_0, window_bounds = array<i64: 8, 16>}, {pipeline_mode = #tpu.pipeline_mode<synchronous>, transform_indices = @transform_1, window_bounds = array<i64: 16, 32>}, {pipeline_mode = #tpu.pipeline_mode<synchronous>, transform_indices = @transform_2, window_bounds = array<i64: 1, 32>}, {pipeline_mode = #tpu.pipeline_mode<synchronous>, transform_indices = @transform_3, window_bounds = array<i64: 32, 32>}, {pipeline_mode = #tpu.pipeline_mode<synchronous>, transform_indices = @transform_4, window_bounds = array<i64: 1, 32>}, {pipeline_mode = #tpu.pipeline_mode<synchronous>, transform_indices = @transform_5, window_bounds = array<i64: 32, 4>}, {pipeline_mode = #tpu.pipeline_mode<synchronous>, transform_indices = @transform_6, window_bounds = array<i64: 1, 4>}, {transform_indices = @transform_7, window_bounds = array<i64: 8, 4>}]} {
    %c0 = arith.constant 0 : index
    %c0_0 = arith.constant 0 : index
    %0 = vector.load %arg1[%c0, %c0_0] : memref<8x16xf32, #tpu.memory_space<vmem>>, vector<8x16xf32>
    %c0_1 = arith.constant 0 : index
    %c0_2 = arith.constant 0 : index
    %1 = vector.load %arg2[%c0_1, %c0_2] : memref<16x32xf32, #tpu.memory_space<vmem>>, vector<16x32xf32>
    %cst = arith.constant dense<0.000000e+00> : vector<8x32xf32>
    %2 = tpu.matmul %0, %1, %cst {dimension_numbers = #tpu.dot_dimension_numbers<[1], [0], [0], [1], [0, 0, 1, 1], [], []>} : vector<8x16xf32>, vector<16x32xf32>, vector<8x32xf32> -> vector<8x32xf32>
    %c0_3 = arith.constant 0 : index
    %c0_4 = arith.constant 0 : index
    %3 = vector.load %arg3[%c0_3, %c0_4] : memref<1x32xf32, #tpu.memory_space<vmem>>, vector<1x32xf32>
    %4 = vector.broadcast %3 : vector<1x32xf32> to vector<8x32xf32>
    %5 = arith.addf %2, %4 : vector<8x32xf32>
    %cst_5 = arith.constant 0.000000e+00 : f32
    %6 = vector.broadcast %cst_5 : f32 to vector<8x32xf32>
    %7 = arith.maximumf %5, %6 : vector<8x32xf32>
    %c0_6 = arith.constant 0 : index
    %c0_7 = arith.constant 0 : index
    %8 = vector.load %arg4[%c0_6, %c0_7] : memref<32x32xf32, #tpu.memory_space<vmem>>, vector<32x32xf32>
    %cst_8 = arith.constant dense<0.000000e+00> : vector<8x32xf32>
    %9 = tpu.matmul %7, %8, %cst_8 {dimension_numbers = #tpu.dot_dimension_numbers<[1], [0], [0], [1], [0, 0, 1, 1], [], []>} : vector<8x32xf32>, vector<32x32xf32>, vector<8x32xf32> -> vector<8x32xf32>
    %c0_9 = arith.constant 0 : index
    %c0_10 = arith.constant 0 : index
    %10 = vector.load %arg5[%c0_9, %c0_10] : memref<1x32xf32, #tpu.memory_space<vmem>>, vector<1x32xf32>
    %11 = vector.broadcast %10 : vector<1x32xf32> to vector<8x32xf32>
    %12 = arith.addf %9, %11 : vector<8x32xf32>
    %cst_11 = arith.constant 0.000000e+00 : f32
    %13 = vector.broadcast %cst_11 : f32 to vector<8x32xf32>
    %14 = arith.maximumf %12, %13 : vector<8x32xf32>
    %c0_12 = arith.constant 0 : index
    %c0_13 = arith.constant 0 : index
    %15 = vector.load %arg6[%c0_12, %c0_13] : memref<32x4xf32, #tpu.memory_space<vmem>>, vector<32x4xf32>
    %cst_14 = arith.constant dense<0.000000e+00> : vector<8x4xf32>
    %16 = tpu.matmul %14, %15, %cst_14 {dimension_numbers = #tpu.dot_dimension_numbers<[1], [0], [0], [1], [0, 0, 1, 1], [], []>} : vector<8x32xf32>, vector<32x4xf32>, vector<8x4xf32> -> vector<8x4xf32>
    %c0_15 = arith.constant 0 : index
    %c0_16 = arith.constant 0 : index
    %17 = vector.load %arg7[%c0_15, %c0_16] : memref<1x4xf32, #tpu.memory_space<vmem>>, vector<1x4xf32>
    %18 = vector.broadcast %17 : vector<1x4xf32> to vector<8x4xf32>
    %19 = arith.addf %16, %18 : vector<8x4xf32>
    %c0_17 = arith.constant 0 : index
    %c0_18 = arith.constant 0 : index
    %20 = vector.load %arg8[%c0_17, %c0_18] : memref<8x4xf32, #tpu.memory_space<vmem>>, vector<8x4xf32>
    tpu.vector_store %arg8[%c0_17, %c0_18], %19 {strides = array<i32>} : memref<8x4xf32, #tpu.memory_space<vmem>>, vector<8x4xf32>,
    return
  }
  func.func @transform_0(%arg0: i32) -> (i32, i32) {
    %c0_i32 = arith.constant 0 : i32
    %c0_i32_0 = arith.constant 0 : i32
    return %arg0, %c0_i32 : i32, i32
  }
  func.func @transform_1(%arg0: i32) -> (i32, i32) {
    %c0_i32 = arith.constant 0 : i32
    %c0_i32_0 = arith.constant 0 : i32
    %c0_i32_1 = arith.constant 0 : i32
    return %c0_i32, %c0_i32_0 : i32, i32
  }
  func.func @transform_2(%arg0: i32) -> (i32, i32) {
    %c0_i32 = arith.constant 0 : i32
    %c0_i32_0 = arith.constant 0 : i32
    %c0_i32_1 = arith.constant 0 : i32
    return %c0_i32, %c0_i32_0 : i32, i32
  }
  func.func @transform_3(%arg0: i32) -> (i32, i32) {
    %c0_i32 = arith.constant 0 : i32
    %c0_i32_0 = arith.constant 0 : i32
    %c0_i32_1 = arith.constant 0 : i32
    return %c0_i32, %c0_i32_0 : i32, i32
  }
  func.func @transform_4(%arg0: i32) -> (i32, i32) {
    %c0_i32 = arith.constant 0 : i32
    %c0_i32_0 = arith.constant 0 : i32
    %c0_i32_1 = arith.constant 0 : i32
    return %c0_i32, %c0_i32_0 : i32, i32
  }
  func.func @transform_5(%arg0: i32) -> (i32, i32) {
    %c0_i32 = arith.constant 0 : i32
    %c0_i32_0 = arith.constant 0 : i32
    %c0_i32_1 = arith.constant 0 : i32
    return %c0_i32, %c0_i32_0 : i32, i32
  }
  func.func @transform_6(%arg0: i32) -> (i32, i32) {
    %c0_i32 = arith.constant 0 : i32
    %c0_i32_0 = arith.constant 0 : i32
    %c0_i32_1 = arith.constant 0 : i32
    return %c0_i32, %c0_i32_0 : i32, i32
  }
  func.func @transform_7(%arg0: i32) -> (i32, i32) {
    %c0_i32 = arith.constant 0 : i32
    %c0_i32_0 = arith.constant 0 : i32
    return %arg0, %c0_i32 : i32, i32
  }
}

</mosaic_0001>

<bundles_post_ra>
// kernel: tpu_custom_call.1
= control target key start
LH: loop header
LB: loop body
LE: loop exit
PB: predicated region body
PF: predicated region fallthrough
CT: control target
= control target key end

     0   :  { %12 = vsyncpa [#allocation3], 0  ;;  %s547_s0 = inlined_call_operand.vmem [shape: f32[2,16], index: 0, kind: input, shape index: {}]   ;;  %s548_s1 = inlined_call_operand.hbm [shape: f32[16,32], index: 1, kind: input, shape index: {}]   ;;  %s549_s2 = inlined_call_operand.vmem [shape: f32[1,32], index: 2, kind: input, shape index: {}]   ;;  %s550_s3 = inlined_call_operand.vmem [shape: f32[32,32], index: 3, kind: input, shape index: {}]   ;;  %s551_s4 = inlined_call_operand.vmem [shape: f32[1,32], index: 4, kind: input, shape index: {}]   ;;  %s552_s5 = inlined_call_operand.vmem [shape: f32[32,4], index: 5, kind: input, shape index: {}]   ;;  %s553_s6 = inlined_call_operand.vmem [shape: f32[1,4], index: 6, kind: input, shape index: {}]   ;;  %s554_s7 = inlined_call_operand.hbm [shape: f32[2,4], index: 7, kind: output, shape index: {}]  }
   0x1   :  { %13 = vsyncpa [#allocation4], 0  ;;  %s435_s24 = smov [#allocation2]   ;;  %s387_s28 = scalar_lea.hbm %s548_s1, 256 }
   0x2   :  { %s21_s25 = sshll.u32 %s435_s24, 4  ;;  %p388_p0 = scmp.ne.s32.totalorder %s548_s1, %s387_s28  ;;  %s22_s25 = int_to_ptr.vmem [resolvable:$true] %s21_s25 }
   0x3   :  { %p391_p1 = scmp.lt.u32.totalorder %s387_s28, %s548_s1 }
   0x5   :  { %p393_p2 = pnand %p391_p1, %p388_p0 }
   0x7   :  { %396 = shalt.err (!%p393_p2)
}
   0x8   :  { %s397_s10 = scalar_lea.vmem %s22_s25, 256  ;;  %p402_p4 = scmp.lt.s32.totalorder %s22_s25, %s22_s25 }
   0x9   :  { %p398_p3 = scmp.ne.s32.totalorder %s22_s25, %s397_s10  ;;  %p403_p5 = scmp.lt.s32.totalorder %s397_s10, %s397_s10 }
   0xb   :  { %p404_p6 = por %p403_p5, %p402_p4 }
   0xd   :  { %p405_p7 = pnand %p404_p6, %p398_p3 }
   0xf   :  { %408 = shalt.err (!%p405_p7)
}
  0x10   :  { %s436_s11 = smov 128   ;;  %s437_s12 = smov 8  }
  0x11   :  { %27 = dma.hbm_to_vmem [thread:$0]  %s548_s1, 256, %s22_s25, [#allocation3], %s436_s11, %s436_s11, %s437_s12  }
  0x12   :  { %431 = dma.done.wait [#allocation3], 256  }
  0x13   :  { %432 = vsyncadd [#allocation3], 4294967040  ;;  %v438_v0 = vmov 0.0|0.0   ;;  %vm439_vm0 = vmmov 0   ;;  %v440_v1 = vmov 0.0   ;;  %v42_v2 = vld [vmem:[#allocation2] sm:$0xff] }
  0x14   :  { %363 = vmatprep.subr.bf16.mxu0 %v438_v0  ;;  %338 = vmatprep.mubr.msk.f32.mxu0 %vm439_vm0, %v440_v1  ;;  %v43_v3 = vld [vmem:[#allocation2 + $0x8] sm:$0xff]  ;;  %v126_v5 = vld [vmem:[%s550_s3] sm:$0xff]  ;;  %vm51_vm1 = vcmask 130048   ;;  %v128_v9 = vld [vmem:[%s550_s3 + $0x10] sm:$0xff]  ;;  %vm137_vm2 = vcmask 261120   ;;  %vm296_vm3 = vcmask 31744  }
  0x15   :  { %366 = vmatprep.subr.bf16.mxu1 %v438_v0  ;;  %349 = vmatprep.mubr.msk.f32.mxu1 %vm439_vm0, %v440_v1  ;;  %v364_v4 = vpack.c.bf16 %v43_v3, %v42_v2  ;;  %v127_v6 = vld [vmem:[%s550_s3 + $0x8] sm:$0xff]  ;;  %v41_v8 = vld [vmem:[%s547_s0] sm:$0xff]  ;;  %v129_v10 = vld [vmem:[%s550_s3 + $0x18] sm:$0xff] }
  0x16   :  { %v367_v7 = vpack.c.bf16 %v127_v6, %v126_v5  ;;  %v370_v11 = vpack.c.bf16 %v129_v10, %v128_v9  ;;  %v212_v12 = vld [vmem:[%s552_s5] sm:$0xff]  ;;  %v213_v13 = vld [vmem:[%s552_s5 + $0x8] sm:$0xff]  ;;  %v214_v20 = vld [vmem:[%s552_s5 + $0x10] sm:$0xff] }
  0x17   :  { %365 = vmatpush3.bf16.msra.mxu0 %v364_v4  ;;  %v373_v14 = vpack.c.bf16 %v213_v13, %v212_v12  ;;  %v315_v15 = vld [vmem:[%s549_s2] ss:$0 sm:$0xff]  ;;  %v215_v21 = vld [vmem:[%s552_s5 + $0x18] sm:$0xff] }
  0x18   :  { %368 = vmatpush3.bf16.msra.mxu1 %v367_v7  ;;  %372 = vmatprep.subr.bf16.mxu0 %v438_v0  ;;  %v376_v22 = vpack.c.bf16 %v215_v21, %v214_v20  ;;  %v317_v23 = vld [vmem:[%s551_s4] ss:$0 sm:$0xff] }
  0x19   :  { %369 = vmatprep.subr.bf16.mxu1 %v438_v0  ;;  %v319_v28 = vld [vmem:[%s553_s6] ss:$0 sm:$0xff] }
  0x1a   :  { %339 = vmatmul.mubr.msk.f32.vlgmr.msra.gmra.mrb[0].mxu0 %vm51_vm1, %v41_v8 }
  0x1b   :  { %360 = vmatprep.mubr.msk.f32.mxu0 %vm439_vm0, %v440_v1  ;;  %374 = vmatpush3.bf16.msra.mxu0 %v373_v14 }
  0x1c   :  { %371 = vmatpush3.bf16.msra.mxu1 %v370_v11  ;;  %375 = vmatprep.subr.bf16.mxu0 %v438_v0 }
  0x1f   :  { %377 = vmatpush3.bf16.msra.mxu0 %v376_v22 }
  0xed   :  { %v121_v16 = vpop.f32.mrb[0].mxu0 }
  0xee   :  { %v122_v17 = vadd.f32 %v315_v15, %v121_v16  ;;  %v340_v18 = vpop.f32.mrb[1].mxu0 }
  0xf0   :  { %v125_v19 = vmax.f32 %v122_v17, 0.0 }
  0xf2   :  { %350 = vmatmul.mubr.msk.f32.vlgmr.msra.gmra.mrb[0].mxu1 %vm137_vm2, %v125_v19 }
 0x1c5   :  { %v207_v24 = vpop.f32.mrb[0].mxu1 }
 0x1c6   :  { %v208_v25 = vadd.f32 %v317_v23, %v207_v24  ;;  %v351_v26 = vpop.f32.mrb[1].mxu1 }
 0x1c8   :  { %v211_v27 = vmax.f32 %v208_v25, 0.0 }
 0x1ca   :  { %361 = vmatmul.mubr.msk.f32.vlgmr.msra.gmra.mrb[2].mxu0 %vm137_vm2, %v211_v27 }
 0x29d   :  { %v292_v29 = vpop.f32.mrb[2].mxu0 }
 0x29e   :  { %v293_v30 = vadd.f32 %v319_v28, %v292_v29  ;;  %v362_v31 = vpop.f32.mrb[3].mxu0 }
 0x2a0   :  { %297 = vst.msk [vmem:[#allocation5] sm:$0xff] %vm296_vm3, %v293_v30 }
 0x2a1   :  { %302 = vsyncadd [#allocation4], 96  ;;  %s441_s5 = smov [#allocation5]  }
 0x2a2   :  { %s303_s12 = sshll.u32 %s441_s5, 4  ;;  %s304_s12 = int_to_ptr.vmem [resolvable:$true] %s303_s12 }
 0x2a3   :  { %s409_s13 = scalar_lea.vmem %s304_s12, 32  ;;  %s413_s4 = scalar_lea.vmem %s304_s12, 128 }
 0x2a4   :  { %p410_p8 = scmp.ne.s32.totalorder %s304_s12, %s409_s13  ;;  %p414_p9 = scmp.lt.s32.totalorder %s304_s12, %s304_s12 }
 0x2a5   :  { %p415_p10 = scmp.lt.s32.totalorder %s413_s4, %s409_s13 }
 0x2a7   :  { %p416_p11 = por %p415_p10, %p414_p9 }
 0x2a9   :  { %p417_p12 = pnand %p416_p11, %p410_p8 }
 0x2ab   :  { %420 = shalt.err (!%p417_p12)
}
 0x2ac   :  { %s421_s6 = scalar_lea.hbm %s554_s7, 32 }
 0x2ad   :  { %p422_p13 = scmp.ne.s32.totalorder %s554_s7, %s421_s6  ;;  %p425_p0 = scmp.lt.u32.totalorder %s421_s6, %s554_s7 }
 0x2af   :  { %p427_p1 = pnand %p425_p0, %p422_p13 }
 0x2b1   :  { %430 = shalt.err (!%p427_p1)
}
 0x2b2   :  { %s442_s19 = smov 32   ;;  %s443_s20 = smov 2  }
 0x2b3   :  { %309 = dma.vmem_to_hbm [thread:$0]  %s304_s12, 32, %s554_s7, [#allocation4], %s442_s19, %s442_s19, %s443_s20  }
 0x2b4   :  { %433 = dma.done.wait [#allocation4], 128  }
 0x2b5   :  { %434 = vsyncadd [#allocation4], 4294967168 }
 0x2b6   :  { %313 = vsyncpa [#allocation3], 1 }
 0x2b7   :  { %314 = vsyncpa [#allocation4], 1 }

</bundles_post_ra>
